<compile_context>
chip_gen: v7x
topology: tpu7x:2x2x1
jax: 0.10.0
libtpu: 0.0.40
codegen_flags: <defaults>
</compile_context>

<pallas_src>
import math
from functools import partial

import numpy as np
import jax
import jax.numpy as jnp
from jax import lax
from jax.experimental import pallas as pl
from jax.experimental.pallas import tpu as pltpu

# ----------------------------- configuration ------------------------------
BATCH = 2
SEQ = 8
HIDDEN = 32
NUM_HEADS = 4
HEAD_SIZE = HIDDEN // NUM_HEADS
MAX_LENGTH = 16
ROPE_BASE = 10000.0


# ------------------------------ Pallas kernel ------------------------------
def attention_kernel(x_ref, wqkv_ref, wo_ref, c_ref, o_ref, *, hidden, bs, bhs):
    """Whole attention layer in one grid-less invocation.

    x_ref    : (BS, H)       activations (BS = batch*seq)
    wqkv_ref : (H+1, 5H)     [Wq*s | Wq@R*s | Wk | Wk@R | Wv]; last row = biases
    wo_ref   : (H+1, H)      Wo; last row = bo
    c_ref    : (BHS, 240)    packed constants (BHS = batch*heads*seq)
    """
    f32 = jnp.float32
    H = hidden
    x = x_ref[...]                                                   # (BS, H)

    # --- fused projection: q, q_rot, k, k_rot, v in one MXU matmul ----------
    # rotate_half and 1/sqrt(head_size) are pre-folded into the weight cols.
    qkv = (jnp.dot(x, wqkv_ref[0:H, :], preferred_element_type=f32)
           + wqkv_ref[H:H + 1, :])                                   # (BS, 5H)

    # --- unpack constant slab (static ref slices, tile-boundary aligned) ----
    oc = 0
    bmask = c_ref[0:bs, oc:oc + bhs]; oc += bhs      # (BS, BHS) same-batch mask
    cosx = c_ref[:, oc:oc + H]; oc += H              # (BHS, H) expanded cos * hmask
    sinx = c_ref[:, oc:oc + H]; oc += H              # (BHS, H) expanded sin * hmask
    hmask = c_ref[:, oc:oc + H]; oc += H             # (BHS, H) per-head column mask
    cos_q = c_ref[0:bs, oc:oc + H]; oc += H          # (BS, H)
    sin_q = c_ref[0:bs, oc:oc + H]; oc += H          # (BS, H)
    expand = c_ref[:, oc:oc + bs]                    # (BHS, BS) row replication

    # --- RoPE on q: elementwise only (rotate matmul folded into weights) ----
    q = qkv[:, 0:H] * cos_q + qkv[:, H:2 * H] * sin_q               # (BS, H), scaled

    # --- single matmul expands k_raw / k_rot / v to per-(batch, head) rows --
    kvx = jnp.dot(expand, qkv[:, 2 * H:5 * H],
                  preferred_element_type=f32)                        # (BHS, 3H)
    kx = kvx[:, 0:H] * cosx + kvx[:, H:2 * H] * sinx                 # roped + head-masked
    vx = kvx[:, 2 * H:3 * H] * hmask

    # --- all (batch, head) attention scores in one NT matmul ----------------
    s = lax.dot_general(q, kx, (((1,), (1,)), ((), ())),
                        preferred_element_type=f32)                  # (BS, BHS)

    # --- softmax with deferred normalization --------------------------------
    # Row max is taken over ALL columns, including cross-batch ones that bmask
    # zeroes afterwards; the deferred denominator normalizes exactly, so this
    # is benign — do not "fix" it by masking before the max.
    m = jnp.max(s, axis=-1, keepdims=True)
    e = jnp.exp(s - m) * bmask
    ctx = jnp.dot(e, vx, preferred_element_type=f32)                 # (BS, H)
    den = jnp.dot(e, hmask, preferred_element_type=f32)              # per-head sums
    # approx=True (EUP vrcp) misses the 1e-5 test tolerance; keep exact.
    ctx = ctx * pl.reciprocal(den, approx=False)

    # --- output projection ---------------------------------------------------
    out = (jnp.dot(ctx, wo_ref[0:H, :], preferred_element_type=f32)
           + wo_ref[H:H + 1, :])
    o_ref[...] = out.astype(o_ref.dtype)


# --------------------------- constant tables --------------------------------
def make_rope_tables(seq_len, head_size, base=ROPE_BASE):
    # angle(pos, t) = pos / base^(2t / head_size); interleave-duplicated.
    j = np.arange(0, head_size, 2, dtype=np.float32)
    inv_freq = 1.0 / np.power(base, j / head_size)                   # (hs/2,)
    pos = np.arange(seq_len, dtype=np.float32)[:, None]              # (S, 1)
    ang = pos * inv_freq[None, :]                                    # (S, hs/2)
    sin_pos = np.repeat(np.sin(ang), 2, axis=-1).astype(np.float32)  # (S, hs)
    cos_pos = np.repeat(np.cos(ang), 2, axis=-1).astype(np.float32)  # (S, hs)
    return sin_pos, cos_pos


def build_attention_constants(batch, seq, hidden, num_heads, head_size,
                              base=ROPE_BASE):
    B, S, H, nh, hs = batch, seq, hidden, num_heads, head_size
    BS, BHS = B * S, B * nh * S

    sin_h, cos_h = make_rope_tables(S, hs, base)                     # (S, hs)
    sin_row = np.tile(sin_h, (1, nh))                                # (S, H)
    cos_row = np.tile(cos_h, (1, nh))
    sin_full = np.tile(sin_row, (B, 1))                              # (BS, H)
    cos_full = np.tile(cos_row, (B, 1))

    # Block-diagonal rotate-half matrix: x @ Rbd == rotate_half(x) per head.
    R = np.zeros((hs, hs), np.float32)
    t = np.arange(hs // 2)
    R[2 * t + 1, 2 * t] = -1.0      # out[:, 2t]   = -x[:, 2t+1]
    R[2 * t, 2 * t + 1] = 1.0       # out[:, 2t+1] =  x[:, 2t]
    rot_bd = np.kron(np.eye(nh, dtype=np.float32), R)                # (H, H)

    # expand[b*nh*S + h*S + j, b*S + j] = 1 (replicate rows once per head);
    # head_mask[b*nh*S + h*S + j, c]   = 1 iff c in head h's column block;
    # cosx/sinx are the RoPE tables broadcast to the expanded row layout.
    expand = np.zeros((BHS, BS), np.float32)
    hmask = np.zeros((BHS, H), np.float32)
    cosx = np.zeros((BHS, H), np.float32)
    sinx = np.zeros((BHS, H), np.float32)
    for b in range(B):
        for h in range(nh):
            r0 = b * nh * S + h * S
            expand[r0:r0 + S, b * S:(b + 1) * S] = np.eye(S, dtype=np.float32)
            hmask[r0:r0 + S, h * hs:(h + 1) * hs] = 1.0
            cosx[r0:r0 + S, :] = cos_row
            sinx[r0:r0 + S, :] = sin_row

    # batch_mask[b*S + i, b'*nh*S + ...] = 1 iff b == b'
    bmask = np.zeros((BS, BHS), np.float32)
    for b in range(B):
        bmask[b * S:(b + 1) * S, b * nh * S:(b + 1) * nh * S] = 1.0

    # Packed constant slab.  Chunk order chosen so that no chunk crosses a
    # 128-lane tile boundary: bmask[0:64] cosx[64:96] sinx[96:128]
    # hmask[128:160] cos_q[160:192] sin_q[192:224] expand[224:240].
    cols = BHS + 5 * H + BS
    slab = np.zeros((BHS, cols), np.float32)
    oc = 0
    slab[:BS, oc:oc + BHS] = bmask; oc += BHS
    slab[:, oc:oc + H] = cosx * hmask; oc += H
    slab[:, oc:oc + H] = sinx * hmask; oc += H
    slab[:, oc:oc + H] = hmask; oc += H
    slab[:BS, oc:oc + H] = cos_full; oc += H
    slab[:BS, oc:oc + H] = sin_full; oc += H
    slab[:, oc:oc + BS] = expand; oc += BS
    assert oc == cols
    return rot_bd, slab


# ------------------------------ wrapper --------------------------------------
def make_attention_fn(wq, bq, wk, bk, wv, bv, wo, bo, *, batch, seq, num_heads,
                      base=ROPE_BASE):
    """Fold/pack all constants once, return a jitted per-call function."""
    H = int(wq.shape[0])
    hs = H // num_heads
    BS, BHS = batch * seq, batch * num_heads * seq
    scale = 1.0 / math.sqrt(hs)

    f32np = lambda a: np.asarray(a, dtype=np.float32)
    wq_np, bq_np = f32np(wq), f32np(bq)
    wk_np, bk_np = f32np(wk), f32np(bk)
    wv_np, bv_np = f32np(wv), f32np(bv)
    wo_np, bo_np = f32np(wo), f32np(bo)

    rot_bd, slab = build_attention_constants(batch, seq, H, num_heads, hs, base)

    # Fused projection slab: columns [Wq*s | Wq@R*s | Wk | Wk@R | Wv],
    # bias row appended at the bottom.  The 1/sqrt(hs) score scale and the
    # rotate-half map (both linear) are folded in here once.
    wq_s, bq_s = wq_np * scale, bq_np * scale
    w_cols = np.concatenate(
        [wq_s, wq_s @ rot_bd, wk_np, wk_np @ rot_bd, wv_np], axis=1)   # (H, 5H)
    b_cols = np.concatenate(
        [bq_s, bq_s @ rot_bd, bk_np, bk_np @ rot_bd, bv_np], axis=1)   # (1, 5H)
    wqkv_slab = np.concatenate([w_cols, b_cols], axis=0)               # (H+1, 5H)
    wo_slab = np.concatenate([wo_np, bo_np], axis=0)                   # (H+1, H)

    # One-time device uploads; baked into the jitted executable as constants.
    wqkv_j = jnp.asarray(wqkv_slab)
    wo_j = jnp.asarray(wo_slab)
    slab_j = jnp.asarray(slab)

    kern = partial(attention_kernel, hidden=H, bs=BS, bhs=BHS)
    vmem = pl.BlockSpec(memory_space=pltpu.MemorySpace.VMEM)

    @jax.jit
    def attention_fn(x):
        b, s, h = x.shape
        assert (b, s, h) == (batch, seq, H), "shape must match constant build"
        x2d = x.reshape(b * s, h).astype(jnp.float32)     # free reshape
        out2d = pl.pallas_call(
            kern,
            out_shape=jax.ShapeDtypeStruct((BS, H), jnp.float32),
            in_specs=[vmem, vmem, vmem, vmem],
            out_specs=vmem,
        )(x2d, wqkv_j, wo_j, slab_j)
        return out2d.reshape(b, s, h)

    return attention_fn


# --------------------------- parameter setup ---------------------------------
def init_linear(key, in_dim, out_dim):
    # Deterministic, torch.nn.Linear-like init: U(-1/sqrt(in), 1/sqrt(in)).
    kw, kb = jax.random.split(key)
    lim = 1.0 / math.sqrt(in_dim)
    w = jax.random.uniform(kw, (in_dim, out_dim), jnp.float32, -lim, lim)
    b = jax.random.uniform(kb, (1, out_dim), jnp.float32, -lim, lim)
    return w, b


# ------------------------------ pure-JAX reference ---------------------------
def attention_ref(x, wq, bq, wk, bk, wv, bv, wo, bo, sin_pos, cos_pos,
                  num_heads):
    B, S, H = x.shape
    hs = H // num_heads
    q = x @ wq + bq
    k = x @ wk + bk
    v = x @ wv + bv
    to_heads = lambda t: t.reshape(B, S, num_heads, hs).transpose(0, 2, 1, 3)
    q, k, v = to_heads(q), to_heads(k), to_heads(v)

    def rot_half(t):
        t_even = t[..., ::2]
        t_odd = t[..., 1::2]
        return jnp.stack([-t_odd, t_even], axis=-1).reshape(t.shape)

    q = q * cos_pos + rot_half(q) * sin_pos
    k = k * cos_pos + rot_half(k) * sin_pos
    s = (q @ jnp.swapaxes(k, -2, -1)) / math.sqrt(hs)
    p = jax.nn.softmax(s, axis=-1)
    o = p @ v
    o = o.transpose(0, 2, 1, 3).reshape(B, S, H)
    return o @ wo + bo


# ------------------------------------ main -----------------------------------
if __name__ == "__main__":
    key = jax.random.PRNGKey(0)
    kx, kq, kk, kv, ko = jax.random.split(key, 5)

    x = jax.random.normal(kx, (BATCH, SEQ, HIDDEN), jnp.float32)
    wq, bq = init_linear(kq, HIDDEN, HIDDEN)
    wk, bk = init_linear(kk, HIDDEN, HIDDEN)
    wv, bv = init_linear(kv, HIDDEN, HIDDEN)
    wo, bo = init_linear(ko, HIDDEN, HIDDEN)

    attn = make_attention_fn(wq, bq, wk, bk, wv, bv, wo, bo,
                             batch=BATCH, seq=SEQ, num_heads=NUM_HEADS)
    out = jax.block_until_ready(attn(x))

    sin_pos, cos_pos = make_rope_tables(SEQ, HEAD_SIZE)
    ref = attention_ref(x, wq, bq, wk, bk, wv, bv, wo, bo,
                        jnp.asarray(sin_pos), jnp.asarray(cos_pos), NUM_HEADS)
    np.testing.assert_allclose(np.asarray(out), np.asarray(ref),
                               rtol=1e-5, atol=1e-5)
    print("KERNEL_OK")
</pallas_src>

<mosaic_0001>
module attributes {stable_mosaic.version = 11 : i64} {
  func.func @attention_kernel(%arg0: memref<16x32xf32, #tpu.memory_space<vmem>>, %arg1: memref<33x160xf32, #tpu.memory_space<vmem>>, %arg2: memref<33x32xf32, #tpu.memory_space<vmem>>, %arg3: memref<64x240xf32, #tpu.memory_space<vmem>>, %arg4: memref<16x32xf32, #tpu.memory_space<vmem>>) attributes {dimension_semantics = [], scalar_prefetch = 0 : i64, scratch_operands = 0 : i64, tpu.core_type = #tpu.core_type<tc>} {
    %c0 = arith.constant 0 : index
    %c0_0 = arith.constant 0 : index
    %0 = vector.load %arg0[%c0, %c0_0] : memref<16x32xf32, #tpu.memory_space<vmem>>, vector<16x32xf32>
    %c0_1 = arith.constant 0 : index
    %c0_2 = arith.constant 0 : index
    %1 = vector.load %arg1[%c0_1, %c0_2] : memref<33x160xf32, #tpu.memory_space<vmem>>, vector<32x160xf32>
    %cst = arith.constant dense<0.000000e+00> : vector<16x160xf32>
    %2 = tpu.matmul %0, %1, %cst {dimension_numbers = #tpu.dot_dimension_numbers<[1], [0], [0], [1], [0, 0, 1, 1], [], []>} : vector<16x32xf32>, vector<32x160xf32>, vector<16x160xf32> -> vector<16x160xf32>
    %c32 = arith.constant 32 : index
    %c0_3 = arith.constant 0 : index
    %3 = vector.load %arg1[%c32, %c0_3] : memref<33x160xf32, #tpu.memory_space<vmem>>, vector<1x160xf32>
    %4 = vector.broadcast %3 : vector<1x160xf32> to vector<16x160xf32>
    %5 = arith.addf %2, %4 : vector<16x160xf32>
    %c0_4 = arith.constant 0 : index
    %c0_5 = arith.constant 0 : index
    %6 = vector.load %arg3[%c0_4, %c0_5] : memref<64x240xf32, #tpu.memory_space<vmem>>, vector<16x64xf32>
    %c0_6 = arith.constant 0 : index
    %c64 = arith.constant 64 : index
    %7 = vector.load %arg3[%c0_6, %c64] : memref<64x240xf32, #tpu.memory_space<vmem>>, vector<64x32xf32>
    %c0_7 = arith.constant 0 : index
    %c96 = arith.constant 96 : index
    %8 = vector.load %arg3[%c0_7, %c96] : memref<64x240xf32, #tpu.memory_space<vmem>>, vector<64x32xf32>
    %c0_8 = arith.constant 0 : index
    %c128 = arith.constant 128 : index
    %9 = vector.load %arg3[%c0_8, %c128] : memref<64x240xf32, #tpu.memory_space<vmem>>, vector<64x32xf32>
    %c0_9 = arith.constant 0 : index
    %c160 = arith.constant 160 : index
    %10 = vector.load %arg3[%c0_9, %c160] : memref<64x240xf32, #tpu.memory_space<vmem>>, vector<16x32xf32>
    %c0_10 = arith.constant 0 : index
    %c192 = arith.constant 192 : index
    %11 = vector.load %arg3[%c0_10, %c192] : memref<64x240xf32, #tpu.memory_space<vmem>>, vector<16x32xf32>
    %c0_11 = arith.constant 0 : index
    %c224 = arith.constant 224 : index
    %12 = vector.load %arg3[%c0_11, %c224] : memref<64x240xf32, #tpu.memory_space<vmem>>, vector<64x16xf32>
    %13 = vector.extract_strided_slice %5 {offsets = [0, 0], sizes = [16, 32], strides = [1, 1]} : vector<16x160xf32> to vector<16x32xf32>
    %14 = arith.mulf %13, %10 : vector<16x32xf32>
    %15 = vector.extract_strided_slice %5 {offsets = [0, 32], sizes = [16, 32], strides = [1, 1]} : vector<16x160xf32> to vector<16x32xf32>
    %16 = arith.mulf %15, %11 : vector<16x32xf32>
    %17 = arith.addf %14, %16 : vector<16x32xf32>
    %18 = vector.extract_strided_slice %5 {offsets = [0, 64], sizes = [16, 96], strides = [1, 1]} : vector<16x160xf32> to vector<16x96xf32>
    %cst_12 = arith.constant dense<0.000000e+00> : vector<64x96xf32>
    %19 = tpu.matmul %12, %18, %cst_12 {dimension_numbers = #tpu.dot_dimension_numbers<[1], [0], [0], [1], [0, 0, 1, 1], [], []>} : vector<64x16xf32>, vector<16x96xf32>, vector<64x96xf32> -> vector<64x96xf32>
    %20 = vector.extract_strided_slice %19 {offsets = [0, 0], sizes = [64, 32], strides = [1, 1]} : vector<64x96xf32> to vector<64x32xf32>
    %21 = arith.mulf %20, %7 : vector<64x32xf32>
    %22 = vector.extract_strided_slice %19 {offsets = [0, 32], sizes = [64, 32], strides = [1, 1]} : vector<64x96xf32> to vector<64x32xf32>
    %23 = arith.mulf %22, %8 : vector<64x32xf32>
    %24 = arith.addf %21, %23 : vector<64x32xf32>
    %25 = vector.extract_strided_slice %19 {offsets = [0, 64], sizes = [64, 32], strides = [1, 1]} : vector<64x96xf32> to vector<64x32xf32>
    %26 = arith.mulf %25, %9 : vector<64x32xf32>
    %cst_13 = arith.constant dense<0.000000e+00> : vector<16x64xf32>
    %27 = tpu.matmul %17, %24, %cst_13 {dimension_numbers = #tpu.dot_dimension_numbers<[1], [1], [0], [0], [0, 0, 1, 0], [], []>} : vector<16x32xf32>, vector<64x32xf32>, vector<16x64xf32> -> vector<16x64xf32>
    %cst_14 = arith.constant dense<0xFF800000> : vector<16xf32>
    %28 = vector.multi_reduction <maximumf>, %27, %cst_14 [1] : vector<16x64xf32> to vector<16xf32>
    %29 = vector.shape_cast %28 : vector<16xf32> to vector<16x1xf32>
    %30 = vector.broadcast %29 : vector<16x1xf32> to vector<16x64xf32>
    %31 = arith.subf %27, %30 : vector<16x64xf32>
    %32 = math.exp %31 : vector<16x64xf32>
    %33 = arith.mulf %32, %6 : vector<16x64xf32>
    %cst_15 = arith.constant dense<0.000000e+00> : vector<16x32xf32>
    %34 = tpu.matmul %33, %26, %cst_15 {dimension_numbers = #tpu.dot_dimension_numbers<[1], [0], [0], [1], [0, 0, 1, 1], [], []>} : vector<16x64xf32>, vector<64x32xf32>, vector<16x32xf32> -> vector<16x32xf32>
    %cst_16 = arith.constant dense<0.000000e+00> : vector<16x32xf32>
    %35 = tpu.matmul %33, %9, %cst_16 {dimension_numbers = #tpu.dot_dimension_numbers<[1], [0], [0], [1], [0, 0, 1, 1], [], []>} : vector<16x64xf32>, vector<64x32xf32>, vector<16x32xf32> -> vector<16x32xf32>
    %36 = tpu.reciprocal %35 : vector<16x32xf32> -> vector<16x32xf32>
    %37 = arith.mulf %34, %36 : vector<16x32xf32>
    %c0_17 = arith.constant 0 : index
    %c0_18 = arith.constant 0 : index
    %38 = vector.load %arg2[%c0_17, %c0_18] : memref<33x32xf32, #tpu.memory_space<vmem>>, vector<32x32xf32>
    %cst_19 = arith.constant dense<0.000000e+00> : vector<16x32xf32>
    %39 = tpu.matmul %37, %38, %cst_19 {dimension_numbers = #tpu.dot_dimension_numbers<[1], [0], [0], [1], [0, 0, 1, 1], [], []>} : vector<16x32xf32>, vector<32x32xf32>, vector<16x32xf32> -> vector<16x32xf32>
    %c32_20 = arith.constant 32 : index
    %c0_21 = arith.constant 0 : index
    %40 = vector.load %arg2[%c32_20, %c0_21] : memref<33x32xf32, #tpu.memory_space<vmem>>, vector<1x32xf32>
    %41 = vector.broadcast %40 : vector<1x32xf32> to vector<16x32xf32>
    %42 = arith.addf %39, %41 : vector<16x32xf32>
    %c0_22 = arith.constant 0 : index
    %c0_23 = arith.constant 0 : index
    %43 = vector.load %arg4[%c0_22, %c0_23] : memref<16x32xf32, #tpu.memory_space<vmem>>, vector<16x32xf32>
    tpu.vector_store %arg4[%c0_22, %c0_23], %42 {strides = array<i32>} : memref<16x32xf32, #tpu.memory_space<vmem>>, vector<16x32xf32>,
    return
  }
}

</mosaic_0001>

<bundles_post_ra>
// kernel: attention_fn.1
= control target key start
LH: loop header
LB: loop body
LE: loop exit
PB: predicated region body
PF: predicated region fallthrough
CT: control target
= control target key end

     0   :  { %9 = vsyncpa [#allocation3], 0  ;;  %s1615_s0 = inlined_call_operand.hbm [shape: f32[16,32], index: 0, kind: input, shape index: {}]   ;;  %s1616_s1 = inlined_call_operand.hbm [shape: f32[33,160], index: 1, kind: input, shape index: {}]   ;;  %s1617_s2 = inlined_call_operand.hbm [shape: f32[33,32], index: 2, kind: input, shape index: {}]   ;;  %s1618_s3 = inlined_call_operand.hbm [shape: f32[64,240], index: 3, kind: input, shape index: {}]   ;;  %s1619_s4 = inlined_call_operand.hbm [shape: f32[16,32], index: 4, kind: output, shape index: {}]  }
   0x1   :  { %10 = vsyncpa [#allocation6], 0 }
   0x2   :  { %11 = vsyncpa [#allocation9], 0 }
   0x3   :  { %12 = vsyncpa [#allocation4], 0  ;;  %s1313_s15 = smov [#allocation5]   ;;  %s1195_s19 = scalar_lea.hbm %s1616_s1, 1280 }
   0x4   :  { %s30_s16 = sshll.u32 %s1313_s15, 4  ;;  %p1196_p0 = scmp.ne.s32.totalorder %s1616_s1, %s1195_s19  ;;  %s31_s16 = int_to_ptr.vmem [resolvable:$true] %s30_s16 }
   0x5   :  { %p1199_p1 = scmp.lt.u32.totalorder %s1195_s19, %s1616_s1 }
   0x7   :  { %p1201_p2 = pnand %p1199_p1, %p1196_p0 }
   0x9   :  { %1204 = shalt.err (!%p1201_p2)
}
   0xa   :  { %s1205_s24 = scalar_lea.vmem %s31_s16, 1280  ;;  %p1210_p4 = scmp.lt.s32.totalorder %s31_s16, %s31_s16 }
   0xb   :  { %p1206_p3 = scmp.ne.s32.totalorder %s31_s16, %s1205_s24  ;;  %p1211_p5 = scmp.lt.s32.totalorder %s1205_s24, %s1205_s24 }
   0xd   :  { %p1212_p6 = por %p1211_p5, %p1210_p4 }
   0xf   :  { %p1213_p7 = pnand %p1212_p6, %p1206_p3 }
  0x11   :  { %1216 = shalt.err (!%p1213_p7)
}
  0x12   :  { %s1314_s25 = smov 256   ;;  %s1315_s26 = smov 16  }
  0x13   :  { %36 = dma.hbm_to_vmem [thread:$0]  %s1616_s1, 1280, %s31_s16, [#allocation6], %s1314_s25, %s1314_s25, %s1315_s26  }
  0x14   :  { %s1316_s29 = smov [#allocation2]   ;;  %s1217_s7 = scalar_lea.hbm %s1615_s0, 256 }
  0x15   :  { %s18_s30 = sshll.u32 %s1316_s29, 4  ;;  %p1218_p8 = scmp.ne.s32.totalorder %s1615_s0, %s1217_s7  ;;  %s19_s30 = int_to_ptr.vmem [resolvable:$true] %s18_s30 }
  0x16   :  { %p1221_p9 = scmp.lt.u32.totalorder %s1217_s7, %s1615_s0 }
  0x18   :  { %p1223_p10 = pnand %p1221_p9, %p1218_p8 }
  0x1a   :  { %1226 = shalt.err (!%p1223_p10)
}
  0x1b   :  { %s1227_s12 = scalar_lea.vmem %s19_s30, 256  ;;  %p1232_p12 = scmp.lt.s32.totalorder %s19_s30, %s19_s30 }
  0x1c   :  { %p1228_p11 = scmp.ne.s32.totalorder %s19_s30, %s1227_s12  ;;  %p1233_p13 = scmp.lt.s32.totalorder %s1227_s12, %s1227_s12 }
  0x1e   :  { %p1234_p0 = por %p1233_p13, %p1232_p12 }
  0x20   :  { %p1235_p1 = pnand %p1234_p0, %p1228_p11 }
  0x22   :  { %1238 = shalt.err (!%p1235_p1)
}
  0x23   :  { %s1317_s1 = smov 128   ;;  %s1318_s13 = smov 8  }
  0x24   :  { %24 = dma.hbm_to_vmem [thread:$0]  %s1615_s0, 256, %s19_s30, [#allocation3], %s1317_s1, %s1317_s1, %s1318_s13  }
  0x25   :  { %s1319_s16 = smov [#allocation7]   ;;  %s1320_s18 = smov [#allocation8]  }
  0x26   :  { %s42_s17 = sshll.u32 %s1319_s16, 4  ;;  %s54_s19 = sshll.u32 %s1320_s18, 4  ;;  %s43_s17 = int_to_ptr.vmem [resolvable:$true] %s42_s17  ;;  %s1381_s19 = int_to_ptr.vmem [resolvable:$true] %s54_s19 }
  0x27   :  { %s1239_s22 = scalar_lea.hbm %s1617_s2, 640 }
  0x28   :  { %p1240_p2 = scmp.ne.s32.totalorder %s1617_s2, %s1239_s22  ;;  %p1243_p3 = scmp.lt.u32.totalorder %s1239_s22, %s1617_s2 }
  0x2a   :  { %p1245_p4 = pnand %p1243_p3, %p1240_p2 }
  0x2c   :  { %1248 = shalt.err (!%p1245_p4)
}
  0x2d   :  { %s1249_s0 = scalar_lea.vmem %s43_s17, 640  ;;  %p1254_p6 = scmp.lt.s32.totalorder %s43_s17, %s43_s17 }
  0x2e   :  { %p1250_p5 = scmp.ne.s32.totalorder %s43_s17, %s1249_s0  ;;  %p1255_p7 = scmp.lt.s32.totalorder %s1249_s0, %s1249_s0 }
  0x30   :  { %p1256_p8 = por %p1255_p7, %p1254_p6 }
  0x32   :  { %p1257_p9 = pnand %p1256_p8, %p1250_p5 }
  0x34   :  { %1260 = shalt.err (!%p1257_p9)
}
  0x35   :  { %48 = dma.hbm_to_vmem [thread:$0]  %s1617_s2, 640, %s43_s17, [#allocation6], %s1317_s1, %s1317_s1, %s1318_s13  }
  0x36   :  { %s1261_s7 = scalar_lea.hbm %s1618_s3, 2048 }
  0x37   :  { %p1262_p10 = scmp.ne.s32.totalorder %s1618_s3, %s1261_s7  ;;  %p1265_p11 = scmp.lt.u32.totalorder %s1261_s7, %s1618_s3 }
  0x39   :  { %p1267_p12 = pnand %p1265_p11, %p1262_p10 }
  0x3b   :  { %1270 = shalt.err (!%p1267_p12)
}
  0x3c   :  { %s1271_s12 = scalar_lea.vmem %s1381_s19, 2048  ;;  %p1276_p0 = scmp.lt.s32.totalorder %s1381_s19, %s1381_s19 }
  0x3d   :  { %p1272_p13 = scmp.ne.s32.totalorder %s1381_s19, %s1271_s12  ;;  %p1277_p1 = scmp.lt.s32.totalorder %s1271_s12, %s1271_s12 }
  0x3f   :  { %p1278_p2 = por %p1277_p1, %p1276_p0 }
  0x41   :  { %p1279_p3 = pnand %p1278_p2, %p1272_p13 }
  0x43   :  { %1282 = shalt.err (!%p1279_p3)
}
  0x44   :  { %60 = dma.hbm_to_vmem [thread:$0]  %s1618_s3, 2048, %s1381_s19, [#allocation9], %s1314_s25, %s1314_s25, %s1315_s26  }
  0x45   :  { %1305 = dma.done.wait [#allocation3], 256  }
  0x46   :  { %1306 = vsyncadd [#allocation3], 4294967040 }
  0x47   :  { %1307 = dma.done.wait [#allocation6], 1920  }
  0x48   :  { %1308 = vsyncadd [#allocation6], 4294965376 }
  0x49   :  { %1309 = dma.done.wait [#allocation9], 2048  }
  0x4a   :  { %1310 = vsyncadd [#allocation9], 4294965248  ;;  %v1321_v0 = vmov 0.0   ;;  %v76_v1 = vld [vmem:[#allocation5 + $0x8] sm:$0xff]  ;;  %v78_v2 = vld [vmem:[#allocation5 + $0x18] sm:$0xff]  ;;  %s1322_s3 = smov 32   ;;  %v86_v24 = vlaneseq }
  0x4b   :  { %167 = vmatprep.mubr.f32.mxu0 %v1321_v0  ;;  %v75_v3 = vld [vmem:[#allocation5] sm:$0xff]  ;;  %v1068_v4 = vpack.c.bf16 %v78_v2, %v76_v1  ;;  %v77_v5 = vld [vmem:[#allocation5 + $0x10] sm:$0xff]  ;;  %v80_v6 = vld [vmem:[#allocation5 + $0x28] sm:$0xff]  ;;  %vm96_vm0 = vcmask 261120   ;;  %s1323_s25 = smov 64   ;;  %s1324_s26 = smov 96  }
  0x4c   :  { %v82_v7 = vld [vmem:[#allocation5 + $0x38] sm:$0xff]  ;;  %v1070_v8 = vpack.c.bf16 %v77_v5, %v75_v3  ;;  %v79_v10 = vld [vmem:[#allocation5 + $0x20] sm:$0xff]  ;;  %v81_v11 = vld [vmem:[#allocation5 + $0x30] sm:$0xff]  ;;  %v87_v25 = vshrl.u32 %v86_v24, 7  ;;  %vm255_vm1 = vcmask 130048   ;;  %vm250_vm2 = vcmask 523264  }
  0x4d   :  { %v1072_v9 = vpack.c.bf16 %v82_v7, %v80_v6  ;;  %1069 = vmatprep.subr.bf16.mxu0 %v1068_v4  ;;  %v1418_v12 = vld [vmem:[#allocation8 + $0x8] sm:$0xff]  ;;  %v1074_v13 = vpack.c.bf16 %v81_v11, %v79_v10  ;;  %v1422_v14 = vld [vmem:[#allocation8 + $0x18] sm:$0xff]  ;;  %v74_v17 = vld [vmem:[#allocation2 + $0x8] sm:$0xff]  ;;  %s1325_s15 = smov [#allocation10]  }
  0x4e   :  { %1071 = vmatpush1.bf16.msra.mxu0 %v1070_v8  ;;  %222 = vrot.lane.b32.xlu1 %v1418_v12, %s1322_s3  ;;  %v73_v15 = vld [vmem:[#allocation2] sm:$0xff]  ;;  %v1440_v20 = vld [vmem:[#allocation8 + $0x10] sm:$0xff]  ;;  %v88_v26 = vsub.s32 0, %v87_v25  ;;  %v92_v28 = vsub.s32 1, %v87_v25  ;;  %v1458_v42 = vld [vmem:[#allocation8 + $0x28] sm:$0xff]  ;;  %s897_s16 = sshll.u32 %s1325_s15, 4  ;;  %s898_s16 = int_to_ptr.vmem [resolvable:$true] %s897_s16 }
  0x4f   :  { %1073 = vmatprep.subr.bf16.mxu0 %v1072_v9  ;;  %v1426_v16 = vld [vmem:[#allocation8 + $0x38] sm:$0xff]  ;;  %v183_v21 = vld [vmem:[#allocation8 + $0x30] sm:$0xff]  ;;  %v1462_v43 = vld [vmem:[#allocation8 + $0x48] sm:$0xff]  ;;  %s1283_s17 = scalar_lea.vmem %s898_s16, 256  ;;  %p1288_p5 = scmp.lt.s32.totalorder %s898_s16, %s898_s16 }
  0x50   :  { %v1431_v18 = vld [vmem:[#allocation8 + $0x58] sm:$0xff]  ;;  %v185_v22 = vld [vmem:[#allocation8 + $0x50] sm:$0xff]  ;;  %v1466_v44 = vld [vmem:[#allocation8 + $0x68] sm:$0xff]  ;;  %p1284_p4 = scmp.ne.s32.totalorder %s898_s16, %s1283_s17  ;;  %p1289_p6 = scmp.lt.s32.totalorder %s1283_s17, %s1283_s17 }
  0x51   :  { %v1436_v19 = vld [vmem:[#allocation8 + $0x78] sm:$0xff]  ;;  %v187_v23 = vld [vmem:[#allocation8 + $0x70] sm:$0xff]  ;;  %v1470_v45 = vld [vmem:[#allocation8] sm:$0xff] }
  0x52   :  { %1075 = vmatpush1.bf16.msra.mxu0 %v1074_v13  ;;  %224 = vrot.lane.b32.xlu1 %v1422_v14, %s1322_s3  ;;  %v84_v27 = vld [vmem:[#allocation5 + $0x40] ss:$8 sm:$0x3]  ;;  %v182_v46 = vld [vmem:[#allocation8 + $0x20] sm:$0xff]  ;;  %vm1545_vm3 = vmpackc.low %vm96_vm0, %vm96_vm0  ;;  %p1290_p7 = por %p1289_p6, %p1288_p5 }
  0x53   :  { %v89_v29 = vrot.slane %v84_v27, %v88_v26  ;;  %v93_v30 = vrot.slane %v84_v27, %v92_v28  ;;  %v184_v47 = vld [vmem:[#allocation8 + $0x40] sm:$0xff] }
  0x54   :  { %v186_v48 = vld [vmem:[#allocation8 + $0x60] sm:$0xff]  ;;  %p1291_p8 = pnand %p1290_p7, %p1284_p4 }
  0x55   :  { %911 = vmatmul.mubr.msk.f32.vlgmr.msra.gmra.mrb[0].mxu0 %vm96_vm0, %v73_v15 }
  0x56   :  { %173 = vmatprep.mubr.f32.mxu0 %v1321_v0  ;;  %228 = vrot.lane.b32.xlu1 %v1426_v16, %s1322_s3 }
  0x59   :  { %912 = vmatmul.mubr.msk.f32.gmra.mrb[2].mxu0 %vm96_vm0, %v74_v17 }
  0x5a   :  { %232 = vrot.lane.b32.xlu1 %v1431_v18, %s1322_s3 }
  0x5e   :  { %236 = vrot.lane.b32.xlu1 %v1436_v19, %s1322_s3 }
  0x62   :  { %387 = vrot.lane.b32.xlu1 %v1440_v20, %s1323_s25 }
  0x66   :  { %391 = vrot.lane.b32.xlu1 %v183_v21, %s1323_s25 }
  0x6a   :  { %395 = vrot.lane.b32.xlu1 %v185_v22, %s1323_s25 }
  0x6e   :  { %399 = vrot.lane.b32.xlu1 %v187_v23, %s1323_s25 }
  0x72   :  { %200 = vrot.lane.b32.xlu1 %v1422_v14, %s1324_s26 }
  0xc0   :  { %v223_v32 = vpop.permute.xlu1 %222 }
  0xc1   :  { %988 = vmatprep.mubr.msk.f32.mxu1 %vm255_vm1, %v223_v32 }
  0xc4   :  { %v225_v55 = vpop.permute.xlu1 %224 }
  0xc8   :  { %v229_v60 = vpop.permute.xlu1 %228 }
  0xcc   :  { %v233_v62 = vpop.permute.xlu1 %232 }
  0xd0   :  { %v237_v0 = vpop.permute.xlu1 %236 }
  0xd4   :  { %v388_v1 = vpop.permute.xlu1 %387 }
  0xd8   :  { %v392_v3 = vpop.permute.xlu1 %391 }
  0xdc   :  { %v396_v8 = vpop.permute.xlu1 %395 }
  0xe0   :  { %v400_v21 = vpop.permute.xlu1 %399 }
 0x128   :  { %v169_v31 = vpop.f32.mrb[0].mxu0 }
 0x129   :  { %v1449_v33 = vadd.f32 %v169_v31, %v89_v29  ;;  %v171_v34 = vpop.f32.mrb[1].mxu0 }
 0x12a   :  { %v172_v35 = vadd.f32 %v171_v34, %v93_v30 }
 0x12c   :  { %v175_v36 = vpop.f32.mrb[2].mxu0  ;;  %v1157_v37 = vpack.i.bf16 %v172_v35, %v1449_v33 }
 0x12d   :  { %v1453_v38 = vadd.f32 %v175_v36, %v89_v29  ;;  %v177_v39 = vpop.f32.mrb[3].mxu0 }
 0x12e   :  { %v178_v40 = vadd.f32 %v177_v39, %v93_v30  ;;  %1158 = vrot.lane.b32.xlu0 %v1157_v37, %s1323_s25  ;;  %v201_v30 = vpop.permute.xlu1 %200 }
 0x12f   :  { %v1521_v34 = vmul.f32 %v201_v30, %v1453_v38 }
 0x130   :  { %v1162_v41 = vpack.i.bf16 %v178_v40, %v1453_v38 }
 0x132   :  { %1163 = vrot.lane.b32.xlu0 %v1162_v41, %s1323_s25 }
 0x136   :  { %226 = vrot.lane.b32.xlu0 %v1458_v42, %s1322_s3 }
 0x13a   :  { %230 = vrot.lane.b32.xlu0 %v1462_v43, %s1322_s3 }
 0x13e   :  { %234 = vrot.lane.b32.xlu0 %v1466_v44, %s1322_s3 }
 0x142   :  { %385 = vrot.lane.b32.xlu0 %v1470_v45, %s1323_s25 }
 0x146   :  { %389 = vrot.lane.b32.xlu0 %v182_v46, %s1323_s25 }
 0x14a   :  { %393 = vrot.lane.b32.xlu0 %v184_v47, %s1323_s25 }
 0x14e   :  { %397 = vrot.lane.b32.xlu0 %v186_v48, %s1323_s25 }
 0x152   :  { %198 = vrot.lane.b32.xlu0 %v1418_v12, %s1324_s26 }
 0x1a0   :  { %v1159_v49 = vpop.permute.xlu0 %1158 }
 0x1a1   :  { %v1161_v50 = vunpack.i.h.bf16 %v1159_v49  ;;  %v1160_v51 = vunpack.i.l.bf16 %v1159_v49 }
 0x1a3   :  { %v251_v56 = vsel %vm250_vm2, %v1160_v51, %v1161_v50 }
 0x1a4   :  { %v1164_v52 = vpop.permute.xlu0 %1163 }
 0x1a5   :  { %v1166_v53 = vunpack.i.h.bf16 %v1164_v52  ;;  %v1165_v54 = vunpack.i.l.bf16 %v1164_v52 }
 0x1a7   :  { %v252_v57 = vsel %vm250_vm2, %v1165_v54, %v1166_v53 }
 0x1a8   :  { %v1076_v58 = vpack.c.bf16 %v252_v57, %v251_v56  ;;  %v227_v59 = vpop.permute.xlu0 %226 }
 0x1aa   :  { %1077 = vmatprep.subr.bf16.mxu1 %v1076_v58 }
 0x1ab   :  { %1079 = vmatpush3.bf16.msra.mxu1 %v1076_v58 }
 0x1ac   :  { %v231_v61 = vpop.permute.xlu0 %230 }
 0x1ae   :  { %989 = vmatmul.mubr.msk.f32.vlgmr.msra.gmra.mrb[0].mxu1 %vm255_vm1, %v225_v55 }
 0x1af   :  { %991 = vmatprep.mubr.msk.f32.mxu1 %vm255_vm1, %v227_v59 }
 0x1b0   :  { %v235_v63 = vpop.permute.xlu0 %234 }
 0x1b2   :  { %992 = vmatmul.mubr.msk.f32.gmra.mrb[2].mxu1 %vm255_vm1, %v229_v60 }
 0x1b3   :  { %994 = vmatprep.mubr.msk.f32.mxu1 %vm255_vm1, %v231_v61 }
 0x1b4   :  { %v386_v2 = vpop.permute.xlu0 %385 }
 0x1b6   :  { %995 = vmatmul.mubr.msk.f32.gmra.mrb[4].mxu1 %vm255_vm1, %v233_v62 }
 0x1b7   :  { %997 = vmatprep.mubr.msk.f32.mxu1 %vm255_vm1, %v235_v63 }
 0x1b8   :  { %v390_v4 = vpop.permute.xlu0 %389 }
 0x1ba   :  { %998 = vmatmul.mubr.msk.f32.gmra.mrb[6].mxu1 %vm255_vm1, %v237_v0 }
 0x1bc   :  { %v394_v10 = vpop.permute.xlu0 %393 }
 0x1c0   :  { %v398_v23 = vpop.permute.xlu0 %397 }
 0x1c4   :  { %v199_v32 = vpop.permute.xlu0 %198 }
 0x1c5   :  { %v204_v35 = vmul.f32 %v199_v32, %v1449_v33 }
 0x281   :  { %v1488_v5 = vpop.f32.mrb[0].mxu1 }
 0x282   :  { %v410_v6 = vmul.f32 %v1488_v5, %v388_v1  ;;  %v1491_v7 = vpop.f32.mrb[1].mxu1 }
 0x283   :  { %v409_v9 = vmul.f32 %v386_v2, %v1491_v7 }
 0x284   :  { %427 = vrot.lane.b32.xlu1 %v410_v6, %s1324_s26 }
 0x285   :  { %425 = vrot.lane.b32.xlu0 %v409_v9, %s1324_s26  ;;  %v1496_v11 = vpop.f32.mrb[2].mxu1 }
 0x286   :  { %v412_v13 = vmul.f32 %v1496_v11, %v392_v3  ;;  %v1499_v15 = vpop.f32.mrb[3].mxu1 }
 0x287   :  { %v411_v17 = vmul.f32 %v390_v4, %v1499_v15 }
 0x288   :  { %431 = vrot.lane.b32.xlu1 %v412_v13, %s1324_s26 }
 0x289   :  { %429 = vrot.lane.b32.xlu0 %v411_v17, %s1324_s26  ;;  %v1504_v22 = vpop.f32.mrb[4].mxu1 }
 0x28a   :  { %v414_v24 = vmul.f32 %v1504_v22, %v396_v8  ;;  %v1507_v25 = vpop.f32.mrb[5].mxu1 }
 0x28b   :  { %v413_v26 = vmul.f32 %v394_v10, %v1507_v25 }
 0x28c   :  { %435 = vrot.lane.b32.xlu1 %v414_v24, %s1324_s26 }
 0x28d   :  { %433 = vrot.lane.b32.xlu0 %v413_v26, %s1324_s26  ;;  %v1512_v27 = vpop.f32.mrb[6].mxu1 }
 0x28e   :  { %v416_v28 = vmul.f32 %v1512_v27, %v400_v21  ;;  %v1515_v29 = vpop.f32.mrb[7].mxu1 }
 0x28f   :  { %v415_v31 = vmul.f32 %v398_v23, %v1515_v29 }
 0x290   :  { %439 = vrot.lane.b32.xlu1 %v416_v28, %s1324_s26 }
 0x291   :  { %437 = vrot.lane.b32.xlu0 %v415_v31, %s1324_s26 }
 0x294   :  { %210 = vrot.lane.b32.xlu1 %v1521_v34, %s1324_s26 }
 0x295   :  { %208 = vrot.lane.b32.xlu0 %v204_v35, %s1324_s26 }
 0x298   :  { %459 = vrot.lane.b32.xlu1 %v1422_v14, %s1323_s25 }
 0x299   :  { %457 = vrot.lane.b32.xlu0 %v1418_v12, %s1323_s25 }
 0x29c   :  { %463 = vrot.lane.b32.xlu1 %v1426_v16, %s1323_s25 }
 0x29d   :  { %461 = vrot.lane.b32.xlu0 %v1458_v42, %s1323_s25 }
 0x2a0   :  { %467 = vrot.lane.b32.xlu1 %v1431_v18, %s1323_s25 }
 0x2a1   :  { %465 = vrot.lane.b32.xlu0 %v1462_v43, %s1323_s25 }
 0x2a4   :  { %471 = vrot.lane.b32.xlu1 %v1436_v19, %s1323_s25 }
 0x2a5   :  { %469 = vrot.lane.b32.xlu0 %v1466_v44, %s1323_s25 }
 0x2f6   :  { %v428_v33 = vpop.permute.xlu1 %427 }
 0x2f7   :  { %v450_v36 = vadd.f32 %v428_v33, %v410_v6  ;;  %v426_v37 = vpop.permute.xlu0 %425 }
 0x2f8   :  { %v449_v38 = vadd.f32 %v426_v37, %v409_v9 }
 0x2fa   :  { %v1080_v40 = vpack.c.bf16 %v450_v36, %v449_v38  ;;  %v432_v41 = vpop.permute.xlu1 %431 }
 0x2fb   :  { %v452_v46 = vadd.f32 %v432_v41, %v412_v13  ;;  %v430_v47 = vpop.permute.xlu0 %429 }
 0x2fc   :  { %v451_v48 = vadd.f32 %v430_v47, %v411_v17  ;;  %1082 = vmatprep.subr.msk.bf16.mxu1 %vm1545_vm3, %v1080_v40 }
 0x2fd   :  { %1085 = vmatpush3.bf16.xpose.msk.msra.mxu1 %vm1545_vm3, %v1080_v40 }
 0x2fe   :  { %v1086_v49 = vpack.c.bf16 %v452_v46, %v451_v48  ;;  %v436_v50 = vpop.permute.xlu1 %435 }
 0x2ff   :  { %v434_v51 = vpop.permute.xlu0 %433  ;;  %v454_v52 = vadd.f32 %v436_v50, %v414_v24 }
 0x300   :  { %v453_v53 = vadd.f32 %v434_v51, %v413_v26  ;;  %1088 = vmatprep.subr.msk.bf16.mxu1 %vm1545_vm3, %v1086_v49 }
 0x302   :  { %v440_v54 = vpop.permute.xlu1 %439  ;;  %v1092_v56 = vpack.c.bf16 %v454_v52, %v453_v53 }
 0x303   :  { %v438_v55 = vpop.permute.xlu0 %437  ;;  %v456_v59 = vadd.f32 %v440_v54, %v416_v28 }
 0x304   :  { %v455_v60 = vadd.f32 %v438_v55, %v415_v31 }
 0x305   :  { %1091 = vmatpush3.bf16.xpose.msk.msra.mxu1 %vm1545_vm3, %v1086_v49 }
 0x306   :  { %1094 = vmatprep.subr.msk.bf16.mxu1 %vm1545_vm3, %v1092_v56  ;;  %v211_v57 = vpop.permute.xlu1 %210  ;;  %v1098_v1 = vpack.c.bf16 %v456_v59, %v455_v60 }
 0x307   :  { %v209_v58 = vpop.permute.xlu0 %208  ;;  %v215_v26 = vadd.f32 %v211_v57, %v1521_v34 }
 0x308   :  { %v214_v61 = vadd.f32 %v209_v58, %v204_v35 }
 0x30a   :  { %v460_v62 = vpop.permute.xlu1 %459  ;;  %1016 = vmatprep.mubr.msk.f32.mxu1 %vm96_vm0, %v214_v61  ;;  %v1124_v61 = vpack.c.bf16 %v1426_v16, %v1458_v42  ;;  %v800_v16 = vld [vmem:[#allocation7] sm:$0xff] }
 0x30b   :  { %v482_v63 = vmul.f32 %v1488_v5, %v460_v62  ;;  %v458_v0 = vpop.permute.xlu0 %457  ;;  %v803_v62 = vld [vmem:[#allocation7 + $0x18] sm:$0xff] }
 0x30c   :  { %v481_v2 = vmul.f32 %v458_v0, %v1491_v7 }
 0x30d   :  { %1097 = vmatpush3.bf16.xpose.msk.msra.mxu1 %vm1545_vm3, %v1092_v56  ;;  %v1120_v56 = vpack.c.bf16 %v1422_v14, %v1418_v12  ;;  %v1128_v12 = vpack.c.bf16 %v1431_v18, %v1462_v43  ;;  %v1132_v14 = vpack.c.bf16 %v1436_v19, %v1466_v44 }
 0x30e   :  { %v1167_v3 = vpack.i.bf16 %v482_v63, %v481_v2  ;;  %v464_v4 = vpop.permute.xlu1 %463  ;;  %1100 = vmatprep.subr.msk.bf16.mxu1 %vm1545_vm3, %v1098_v1 }
 0x30f   :  { %v484_v6 = vmul.f32 %v1496_v11, %v464_v4  ;;  %v462_v8 = vpop.permute.xlu0 %461  ;;  %v935_v4 = vld [vmem:[#allocation7 + $0x20] ss:$0 sm:$0xff] }
 0x310   :  { %v483_v9 = vmul.f32 %v462_v8, %v1499_v15  ;;  %1168 = vrot.lane.b32.xlu0 %v1167_v3, %s1323_s25 }
 0x312   :  { %v1172_v5 = vpack.i.bf16 %v484_v6, %v483_v9  ;;  %v468_v10 = vpop.permute.xlu1 %467 }
 0x313   :  { %v486_v13 = vmul.f32 %v1504_v22, %v468_v10  ;;  %v466_v7 = vpop.permute.xlu0 %465 }
 0x314   :  { %v485_v17 = vmul.f32 %v466_v7, %v1507_v25  ;;  %1173 = vrot.lane.b32.xlu1 %v1172_v5, %s1323_s25 }
 0x315   :  { %1103 = vmatpush3.bf16.xpose.msk.msra.mxu1 %vm1545_vm3, %v1098_v1 }
 0x316   :  { %v1177_v21 = vpack.i.bf16 %v486_v13, %v485_v17  ;;  %v472_v23 = vpop.permute.xlu1 %471 }
 0x317   :  { %v488_v11 = vmul.f32 %v1512_v27, %v472_v23  ;;  %v470_v24 = vpop.permute.xlu0 %469 }
 0x318   :  { %v487_v15 = vmul.f32 %v470_v24, %v1515_v29 }
 0x31a   :  { %v1182_v28 = vpack.i.bf16 %v488_v11, %v487_v15 }
 0x31c   :  { %1017 = vmatmul.mubr.msk.f32.vlgmr.msra.gmra.mrb[8].mxu1 %vm96_vm0, %v215_v26 }
 0x382   :  { %v1169_v22 = vpop.permute.xlu0 %1168 }
 0x383   :  { %v1171_v30 = vunpack.i.h.bf16 %v1169_v22  ;;  %v1170_v25 = vunpack.i.l.bf16 %v1169_v22 }
 0x385   :  { %v1104_v31 = vpack.c.bf16 %v1171_v30, %v1170_v25 }
 0x386   :  { %v1174_v32 = vpop.permute.xlu1 %1173 }
 0x387   :  { %v1176_v35 = vunpack.i.h.bf16 %v1174_v32  ;;  %v1175_v33 = vunpack.i.l.bf16 %v1174_v32  ;;  %1105 = vmatprep.subr.bf16.mxu0 %v1104_v31 }
 0x388   :  { %1107 = vmatpush3.bf16.msra.mxu0 %v1104_v31 }
 0x389   :  { %v1108_v36 = vpack.c.bf16 %v1176_v35, %v1175_v33 }
 0x38b   :  { %1109 = vmatprep.subr.bf16.mxu0 %v1108_v36 }
 0x38c   :  { %1111 = vmatpush3.bf16.msra.mxu0 %v1108_v36 }
 0x3ef   :  { %v1018_v27 = vpop.f32.mrb[8].mxu1 }
 0x3f0   :  { %v585_v37 = vpop.f32.mrb[9].mxu1  ;;  %v597_v29 = vsel %vm250_vm2, %v1018_v27, -inf }
 0x3f1   :  { %598 = vmax.xlane.f32.xlu1 %v597_v29  ;;  %v594_v34 = vsel %vm250_vm2, %v585_v37, -inf }
 0x3f2   :  { %595 = vmax.xlane.f32.xlu0 %v594_v34 }
 0x402   :  { %1183 = vrot.lane.b32.xlu1 %v1182_v28, %s1323_s25 }
 0x408   :  { %1178 = vrot.lane.b32.xlu0 %v1177_v21, %s1323_s25 }
 0x47e   :  { %v599_v38 = vpop.xlane.xlu1 %598 }
 0x47f   :  { %v601_v39 = vsub.f32 %v1018_v27, %v599_v38  ;;  %v596_v40 = vpop.xlane.xlu0 %595 }
 0x480   :  { %v600_v41 = vsub.f32 %v585_v37, %v596_v40 }
 0x481   :  { %v604_v46 = vmul.f32 1.442695, %v601_v39 }
 0x482   :  { %v602_v47 = vmul.f32 1.442695, %v600_v41  ;;  %v1184_v48 = vpop.permute.xlu1 %1183 }
 0x483   :  { %1187 = vpow2.f32 %v604_v46  ;;  %v1186_v49 = vunpack.i.h.bf16 %v1184_v48  ;;  %v1179_v50 = vpop.permute.xlu0 %1178  ;;  %v1185_v51 = vunpack.i.l.bf16 %v1184_v48 }
 0x484   :  { %1189 = vpow2.f32 %v602_v47  ;;  %v1181_v52 = vunpack.i.h.bf16 %v1179_v50  ;;  %v1180_v53 = vunpack.i.l.bf16 %v1179_v50 }
 0x485   :  { %v1116_v55 = vpack.c.bf16 %v1186_v49, %v1185_v51 }
 0x486   :  { %v1112_v54 = vpack.c.bf16 %v1181_v52, %v1180_v53 }
 0x488   :  { %1113 = vmatprep.subr.bf16.mxu0 %v1112_v54 }
 0x489   :  { %1115 = vmatpush3.bf16.msra.mxu0 %v1112_v54 }
 0x48a   :  { %1117 = vmatprep.subr.bf16.mxu0 %v1116_v55 }
 0x48d   :  { %v1188_v57 = vpop.eup %1187  ;;  %1119 = vmatpush3.bf16.msra.mxu0 %v1116_v55 }
 0x48e   :  { %v1190_v58 = vpop.eup %1189  ;;  %1121 = vmatprep.subr.bf16.mxu0 %v1120_v56  ;;  %v607_v60 = vmul.f32 %v1188_v57, %v1440_v20  ;;  %v801_v20 = vld [vmem:[#allocation7 + $0x8] sm:$0xff] }
 0x48f   :  { %v606_v59 = vmul.f32 %v1190_v58, %v1470_v45  ;;  %v1136_v42 = vpack.c.bf16 %v801_v20, %v800_v16  ;;  %v802_v45 = vld [vmem:[#allocation7 + $0x10] sm:$0xff] }
 0x490   :  { %v1140_v63 = vpack.c.bf16 %v803_v62, %v802_v45 }
 0x491   :  { %1035 = vmatprep.mubr.msk.f32.mxu0 %vm250_vm2, %v606_v59  ;;  %1137 = vmatprep.subr.bf16.mxu1 %v1136_v42 }
 0x492   :  { %1036 = vmatmul.mubr.msk.f32.vlgmr.msra.gmra.mrb[4].mxu0 %vm250_vm2, %v607_v60  ;;  %1139 = vmatpush3.bf16.msra.mxu1 %v1136_v42 }
 0x493   :  { %1123 = vmatpush3.bf16.msra.mxu0 %v1120_v56  ;;  %1054 = vmatprep.mubr.msk.f32.mxu0 %vm250_vm2, %v606_v59 }
 0x494   :  { %1125 = vmatprep.subr.bf16.mxu0 %v1124_v61  ;;  %1141 = vmatprep.subr.bf16.mxu1 %v1140_v63 }
 0x496   :  { %1143 = vmatpush3.bf16.msra.mxu1 %v1140_v63 }
 0x497   :  { %1127 = vmatpush3.bf16.msra.mxu0 %v1124_v61 }
 0x498   :  { %1129 = vmatprep.subr.bf16.mxu0 %v1128_v12 }
 0x49b   :  { %1131 = vmatpush3.bf16.msra.mxu0 %v1128_v12 }
 0x49c   :  { %1133 = vmatprep.subr.bf16.mxu0 %v1132_v14 }
 0x49f   :  { %1135 = vmatpush3.bf16.msra.mxu0 %v1132_v14 }
 0x4a2   :  { %1055 = vmatmul.mubr.msk.f32.vlgmr.msra.gmra.mrb[6].mxu0 %vm250_vm2, %v607_v60 }
 0x565   :  { %v1037_v18 = vpop.f32.mrb[4].mxu0 }
 0x566   :  { %v712_v43 = vpop.f32.mrb[5].mxu0 }
 0x575   :  { %v1056_v0 = vpop.f32.mrb[6].mxu0 }
 0x576   :  { %1191 = vrcp.f32 %v1056_v0  ;;  %v787_v19 = vpop.f32.mrb[7].mxu0 }
 0x577   :  { %1193 = vrcp.f32 %v787_v19 }
 0x580   :  { %v1192_v44 = vpop.eup %1191 }
 0x581   :  { %v1194_v1 = vpop.eup %1193  ;;  %v799_v2 = vmul.f32 %v1192_v44, %v1037_v18 }
 0x582   :  { %v798_v3 = vmul.f32 %v1194_v1, %v712_v43 }
 0x584   :  { %1065 = vmatprep.mubr.msk.f32.mxu1 %vm96_vm0, %v798_v3 }
 0x585   :  { %1066 = vmatmul.mubr.msk.f32.vlgmr.msra.gmra.mrb[10].mxu1 %vm96_vm0, %v799_v2 }
 0x658   :  { %v1067_v6 = vpop.f32.mrb[10].mxu1 }
 0x659   :  { %v887_v8 = vadd.f32 %v1067_v6, %v935_v4  ;;  %v881_v9 = vpop.f32.mrb[11].mxu1 }
 0x65a   :  { %v882_v5 = vadd.f32 %v935_v4, %v881_v9 }
 0x65b   :  { %891 = vst.msk [vmem:[#allocation10 + $0x8] sm:$0xff] %vm96_vm0, %v887_v8 }
 0x65c   :  { %890 = vst.msk [vmem:[#allocation10] sm:$0xff] %vm96_vm0, %v882_v5 }
 0x65d   :  { %1294 = shalt.err (!%p1291_p8)
}
 0x65e   :  { %s1295_s20 = scalar_lea.hbm %s1619_s4, 256 }
 0x65f   :  { %p1296_p9 = scmp.ne.s32.totalorder %s1619_s4, %s1295_s20  ;;  %p1299_p10 = scmp.lt.u32.totalorder %s1295_s20, %s1619_s4 }
 0x661   :  { %p1301_p11 = pnand %p1299_p10, %p1296_p9 }
 0x663   :  { %1304 = shalt.err (!%p1301_p11)
}
 0x664   :  { %903 = dma.vmem_to_hbm [thread:$0]  %s898_s16, 256, %s1619_s4, [#allocation4], %s1317_s1, %s1317_s1, %s1318_s13  }
 0x665   :  { %1311 = dma.done.wait [#allocation4], 256  }
 0x666   :  { %1312 = vsyncadd [#allocation4], 4294967040 }
 0x667   :  { %907 = vsyncpa [#allocation3], 1 }
 0x668   :  { %908 = vsyncpa [#allocation6], 1 }
 0x669   :  { %909 = vsyncpa [#allocation9], 1 }
 0x66a   :  { %910 = vsyncpa [#allocation4], 1 }

</bundles_post_ra>
